<compile_context>
chip_gen: v5e
topology: v5e:2x2
jax: 0.10.0
libtpu: 0.0.40
codegen_flags: <defaults>
</compile_context>

<pallas_src>
import functools

import jax
import jax.numpy as jnp
import numpy as np
from jax.experimental import pallas as pl
from jax.experimental.pallas import tpu as pltpu


def _vmem_limit_bytes():
    """Per-generation scoped-VMEM budget: ~75% of physical, capped at 96 MiB.

    v5e/v6e (128 MiB physical) -> 96 MiB; v7x (64 MiB physical) -> 48 MiB.
    Falls back to a conservative 32 MiB if the query is unavailable.
    """
    try:
        info = pltpu.get_tpu_info()
        cap = getattr(info, "vmem_capacity_bytes", None)
        if cap:
            return int(min(cap * 3 // 4, 96 * 1024 * 1024))
    except Exception:
        pass
    return 32 * 1024 * 1024


_VMEM_LIMIT_BYTES = _vmem_limit_bytes()


def _pick_tile(n, max_tile):
    """Largest tile <= max_tile that divides n and satisfies the (8,128) sublane rule."""
    if n <= max_tile:
        return n
    for t in range(max_tile, 0, -1):
        if n % t == 0 and t % 8 == 0:
            return t
    # TODO(synk): pad the sequence instead of failing for awkward (e.g. prime) lengths.
    raise ValueError(f"no sublane-aligned tile <= {max_tile} divides {n}; pad the input")


# ----------------------------- linear projection kernel ----------------------


def _linear_kernel(x_ref, w_ref, o_ref):
    o_ref[...] = jnp.dot(x_ref[...], w_ref[...],
                         preferred_element_type=jnp.float32).astype(o_ref.dtype)


def pallas_linear(x2d, w, *, out_dtype=None, block_m=512):
    """x2d: [M, Kin] @ w: [Kin, Kout] -> [M, Kout]; weight resident in VMEM across M tiles."""
    m, kin = x2d.shape
    kout = w.shape[1]
    out_dtype = x2d.dtype if out_dtype is None else out_dtype
    tm = _pick_tile(m, block_m)
    return pl.pallas_call(
        _linear_kernel,
        out_shape=jax.ShapeDtypeStruct((m, kout), out_dtype),
        grid_spec=pltpu.PrefetchScalarGridSpec(
            num_scalar_prefetch=0,
            grid=(m // tm,),
            in_specs=[
                pl.BlockSpec((tm, kin), lambda i: (i, 0)),
                pl.BlockSpec((kin, kout), lambda i: (0, 0)),   # resident weight
            ],
            out_specs=pl.BlockSpec((tm, kout), lambda i: (i, 0)),
        ),
        compiler_params=pltpu.CompilerParams(
            dimension_semantics=("parallel",),
            vmem_limit_bytes=_VMEM_LIMIT_BYTES,
        ),
    )(x2d, w)


# ----------------------------- attention kernels -----------------------------


def _flash_attn_kernel(q_ref, k_ref, v_ref, wo_ref, bo_ref, o_ref,
                       m_sc, l_sc, acc_sc, *, heads, dim_head):
    """Online-softmax over the kv axis; output projection fused into the finalize.

    q_ref: (tq, inner)  k_ref/v_ref: (tk, inner)  wo_ref: (inner, dq)  bo_ref: (1, dq)
    o_ref: (tq, dq)     m_sc/l_sc: (heads, tq, 1) f32   acc_sc: (tq, inner) f32
    """
    ki = pl.program_id(2)

    @pl.when(ki == 0)
    def _init():
        m_sc[...] = jnp.full(m_sc.shape, -jnp.inf, dtype=m_sc.dtype)
        l_sc[...] = jnp.zeros(l_sc.shape, dtype=l_sc.dtype)
        acc_sc[...] = jnp.zeros(acc_sc.shape, dtype=acc_sc.dtype)

    for hi in range(heads):   # static unroll; static lane slices (no head transposes)
        sl = slice(hi * dim_head, (hi + 1) * dim_head)
        q_h = q_ref[:, sl]                 # scale already folded into Wq
        k_h = k_ref[:, sl]
        v_h = v_ref[:, sl]
        # s[i, j] = sum_d q_h[i, d] * k_h[j, d]  (q @ k^T) with f32 MXU accumulation
        s = jax.lax.dot_general(q_h, k_h, (((1,), (1,)), ((), ())),
                                preferred_element_type=jnp.float32)
        m_prev = m_sc[hi]
        m_new = jnp.maximum(m_prev, jnp.max(s, axis=-1, keepdims=True))
        alpha = jnp.exp(m_prev - m_new)
        p = jnp.exp(s - m_new)
        l_sc[hi] = alpha * l_sc[hi] + jnp.sum(p, axis=-1, keepdims=True)
        acc_sc[:, sl] = alpha * acc_sc[:, sl] + jnp.dot(
            p.astype(v_h.dtype), v_h, preferred_element_type=jnp.float32)
        m_sc[hi] = m_new

    @pl.when(ki == pl.num_programs(2) - 1)
    def _finalize():
        for hi in range(heads):
            sl = slice(hi * dim_head, (hi + 1) * dim_head)
            inv = pl.reciprocal(l_sc[hi], approx=True)        # EUP slot
            acc_sc[:, sl] = acc_sc[:, sl] * inv               # in-place, no concatenate
        wo = wo_ref[...]
        out = jnp.dot(acc_sc[...].astype(wo.dtype), wo,
                      preferred_element_type=jnp.float32)
        o_ref[...] = (out + bo_ref[...]).astype(o_ref.dtype)  # single lane-dense store


def _onepass_attn_kernel(q_ref, k_ref, v_ref, wo_ref, bo_ref, o_ref, acc_sc,
                         *, heads, dim_head):
    """Whole kv sequence in one block: plain softmax, no online-softmax bookkeeping."""
    for hi in range(heads):
        sl = slice(hi * dim_head, (hi + 1) * dim_head)
        q_h = q_ref[:, sl]
        k_h = k_ref[:, sl]
        v_h = v_ref[:, sl]
        s = jax.lax.dot_general(q_h, k_h, (((1,), (1,)), ((), ())),
                                preferred_element_type=jnp.float32)
        m = jnp.max(s, axis=-1, keepdims=True)
        p = jnp.exp(s - m)
        inv = pl.reciprocal(jnp.sum(p, axis=-1, keepdims=True), approx=True)
        acc_sc[:, sl] = jnp.dot(p.astype(v_h.dtype), v_h,
                                preferred_element_type=jnp.float32) * inv
    wo = wo_ref[...]
    out = jnp.dot(acc_sc[...].astype(wo.dtype), wo,
                  preferred_element_type=jnp.float32)
    o_ref[...] = (out + bo_ref[...]).astype(o_ref.dtype)


def pallas_attention(q_arr, k_arr, v_arr, w_out, b_out, *, q_blk, k_blk, v_blk,
                     heads, dim_head, nq, nk, out_dtype,
                     block_q=512, block_k=1024):
    """Multi-head attention + fused output projection.

    q_arr/k_arr/v_arr may alias the same fused projection slab; q_blk/k_blk/v_blk select
    which inner-sized block along the last axis holds Q/K/V (requires inner % 128 == 0 when
    the slab is wider than inner).
    Returns [b, nq, query_dim] in out_dtype.
    """
    b = q_arr.shape[0]
    inner = heads * dim_head
    dq = w_out.shape[1]
    tq = _pick_tile(nq, block_q)
    tk = _pick_tile(nk, block_k)
    single_pass = (tk == nk)

    if single_pass:
        grid = (b, nq // tq)
        q_spec = pl.BlockSpec((None, tq, inner), lambda bi, qi: (bi, qi, q_blk))
        k_spec = pl.BlockSpec((None, tk, inner), lambda bi, qi: (bi, 0, k_blk))
        v_spec = pl.BlockSpec((None, tk, inner), lambda bi, qi: (bi, 0, v_blk))
        w_spec = pl.BlockSpec((inner, dq), lambda bi, qi: (0, 0))
        b_spec = pl.BlockSpec((1, dq), lambda bi, qi: (0, 0))
        o_spec = pl.BlockSpec((None, tq, dq), lambda bi, qi: (bi, qi, 0))
        scratch = [pltpu.VMEM((tq, inner), jnp.float32)]
        kern = functools.partial(_onepass_attn_kernel, heads=heads, dim_head=dim_head)
        dims = ("parallel", "parallel")
    else:
        grid = (b, nq // tq, nk // tk)                       # kv (reduction) axis last
        q_spec = pl.BlockSpec((None, tq, inner), lambda bi, qi, ki: (bi, qi, q_blk))
        k_spec = pl.BlockSpec((None, tk, inner), lambda bi, qi, ki: (bi, ki, k_blk))
        v_spec = pl.BlockSpec((None, tk, inner), lambda bi, qi, ki: (bi, ki, v_blk))
        w_spec = pl.BlockSpec((inner, dq), lambda bi, qi, ki: (0, 0))
        b_spec = pl.BlockSpec((1, dq), lambda bi, qi, ki: (0, 0))
        o_spec = pl.BlockSpec((None, tq, dq), lambda bi, qi, ki: (bi, qi, 0))
        scratch = [pltpu.VMEM((heads, tq, 1), jnp.float32),   # running row max
                   pltpu.VMEM((heads, tq, 1), jnp.float32),   # running row denom
                   pltpu.VMEM((tq, inner), jnp.float32)]      # output accumulator
        kern = functools.partial(_flash_attn_kernel, heads=heads, dim_head=dim_head)
        dims = ("parallel", "parallel", "arbitrary")

    return pl.pallas_call(
        kern,
        out_shape=jax.ShapeDtypeStruct((b, nq, dq), out_dtype),
        grid_spec=pltpu.PrefetchScalarGridSpec(
            num_scalar_prefetch=0,
            grid=grid,
            in_specs=[q_spec, k_spec, v_spec, w_spec, b_spec],
            out_specs=o_spec,
            scratch_shapes=scratch,
        ),
        compiler_params=pltpu.CompilerParams(
            dimension_semantics=dims,
            vmem_limit_bytes=_VMEM_LIMIT_BYTES,
        ),
    )(q_arr, k_arr, v_arr, w_out, b_out)


# ----------------------------- module wrapper --------------------------------


class MemoryEfficientCrossAttentionPallas:
    """JAX/Pallas port of MemoryEfficientCrossAttention (inference forward)."""

    def __init__(self, query_dim, context_dim=None, heads=8, dim_head=64,
                 dropout=0.0, zero_init=False, *, key,
                 matmul_dtype=jnp.bfloat16, block_q=512, block_k=1024, block_m=512):
        context_dim = query_dim if context_dim is None else context_dim
        inner_dim = heads * dim_head
        self.heads = heads
        self.dim_head = dim_head
        self.query_dim = query_dim
        self.context_dim = context_dim
        self.inner_dim = inner_dim
        self.matmul_dtype = matmul_dtype     # bf16 default (v5e/v6e/v7x MXU rate)
        self.block_q = block_q
        self.block_k = block_k
        self.block_m = block_m

        k1, k2, k3, k4, k5 = jax.random.split(key, 5)
        if zero_init:
            self.w_q = jnp.zeros((query_dim, inner_dim), jnp.float32)
            self.w_k = jnp.zeros((context_dim, inner_dim), jnp.float32)
            self.w_v = jnp.zeros((context_dim, inner_dim), jnp.float32)
        else:
            self.w_q = jax.random.uniform(
                k1, (query_dim, inner_dim), jnp.float32, -1.0, 1.0) / np.sqrt(query_dim)
            self.w_k = jax.random.uniform(
                k2, (context_dim, inner_dim), jnp.float32, -1.0, 1.0) / np.sqrt(context_dim)
            self.w_v = jax.random.uniform(
                k3, (context_dim, inner_dim), jnp.float32, -1.0, 1.0) / np.sqrt(context_dim)
        self.w_out = jax.random.uniform(
            k4, (inner_dim, query_dim), jnp.float32, -1.0, 1.0) / np.sqrt(inner_dim)
        self.b_out = jax.random.uniform(
            k5, (1, query_dim), jnp.float32, -1.0, 1.0) / np.sqrt(inner_dim)

        # Compute copies: 1/sqrt(dim_head) folded into Wq IN f32, then pre-cast to the MXU
        # operand dtype so no casting / scaling happens inside the kernels.
        scale = float(dim_head) ** (-0.5)
        w_q_scaled = self.w_q * scale
        self.w_q_c = w_q_scaled.astype(matmul_dtype)
        self.w_kv_c = jnp.concatenate([self.w_k, self.w_v], axis=1).astype(matmul_dtype)
        if context_dim == query_dim:    # fused QKV weight for the self-attention path
            self.w_qkv_c = jnp.concatenate(
                [w_q_scaled, self.w_k, self.w_v], axis=1).astype(matmul_dtype)
        else:
            self.w_qkv_c = None
        self.w_out_c = self.w_out.astype(matmul_dtype)
        self.b_out_c = self.b_out.astype(jnp.float32)   # bias added in f32 in the finalize

    def __call__(self, x, context=None):
        b, nq, xdim = x.shape
        is_self = context is None
        ctx = x if is_self else context
        _, nk, cdim = ctx.shape
        assert xdim == self.query_dim and cdim == self.context_dim
        inner = self.inner_dim
        cdt = self.matmul_dtype
        x_c = x.astype(cdt) if x.dtype != cdt else x

        if is_self and self.w_qkv_c is not None and inner % 128 == 0:
            # Self-attention: single fused Q/K/V projection; attention reads Q/K/V straight
            # out of the (b, n, 3*inner) slab via last-axis block indices.
            qkv = pallas_linear(x_c.reshape(b * nq, xdim), self.w_qkv_c,
                                out_dtype=cdt, block_m=self.block_m
                                ).reshape(b, nq, 3 * inner)
            return pallas_attention(
                qkv, qkv, qkv, self.w_out_c, self.b_out_c,
                q_blk=0, k_blk=1, v_blk=2,
                heads=self.heads, dim_head=self.dim_head, nq=nq, nk=nq,
                out_dtype=x.dtype, block_q=self.block_q, block_k=self.block_k)

        ctx_c = ctx.astype(cdt) if ctx.dtype != cdt else ctx
        q = pallas_linear(x_c.reshape(b * nq, xdim), self.w_q_c,
                          out_dtype=cdt, block_m=self.block_m).reshape(b, nq, inner)
        kv = pallas_linear(ctx_c.reshape(b * nk, cdim), self.w_kv_c,
                           out_dtype=cdt, block_m=self.block_m).reshape(b, nk, 2 * inner)
        if inner % 128 == 0:
            # Read K / V halves straight out of the fused kv slab (no HBM slice).
            return pallas_attention(
                q, kv, kv, self.w_out_c, self.b_out_c,
                q_blk=0, k_blk=0, v_blk=1,
                heads=self.heads, dim_head=self.dim_head, nq=nq, nk=nk,
                out_dtype=x.dtype, block_q=self.block_q, block_k=self.block_k)
        # inner not lane-aligned: split in the wrapper instead.
        k_arr = kv[:, :, :inner]
        v_arr = kv[:, :, inner:]
        return pallas_attention(
            q, k_arr, v_arr, self.w_out_c, self.b_out_c,
            q_blk=0, k_blk=0, v_blk=0,
            heads=self.heads, dim_head=self.dim_head, nq=nq, nk=nk,
            out_dtype=x.dtype, block_q=self.block_q, block_k=self.block_k)


# ----------------------------- reference (pure JAX) ---------------------------


def reference_forward(mod, x, context=None):
    b, nq, _ = x.shape
    context = x if context is None else context
    _, nk, _ = context.shape
    h, d = mod.heads, mod.dim_head
    q = x @ mod.w_q
    k = context @ mod.w_k
    v = context @ mod.w_v
    q = q.reshape(b, nq, h, d).transpose(0, 2, 1, 3)
    k = k.reshape(b, nk, h, d).transpose(0, 2, 1, 3)
    v = v.reshape(b, nk, h, d).transpose(0, 2, 1, 3)
    s = jnp.einsum("bhid,bhjd->bhij", q, k) * (d ** -0.5)
    p = jax.nn.softmax(s, axis=-1)
    o = jnp.einsum("bhij,bhjd->bhid", p, v)
    o = o.transpose(0, 2, 1, 3).reshape(b, nq, h * d)
    return o @ mod.w_out + mod.b_out


# ----------------------------- main -------------------------------------------

if __name__ == "__main__":
    key = jax.random.PRNGKey(0)
    k_x, k_ctx, k_m1, k_m2, k_x2, k_ctx2, k_m3 = jax.random.split(key, 7)

    batch = 2
    query_dim = 32
    context_dim = 48
    heads = 2
    dim_head = 64      # inner = 128 (lane-aligned)
    n_q, n_k = 16, 8

    x = jax.random.normal(k_x, (batch, n_q, query_dim), jnp.float32)
    context = jax.random.normal(k_ctx, (batch, n_k, context_dim), jnp.float32)

    # 1) cross-attention, f32 MXU operands (tight tolerance); single-kv-block fast path
    mod = MemoryEfficientCrossAttentionPallas(
        query_dim=query_dim, context_dim=context_dim, heads=heads, dim_head=dim_head,
        key=k_m1, matmul_dtype=jnp.float32)
    out = jax.block_until_ready(mod(x, context))
    ref = jax.block_until_ready(reference_forward(mod, x, context))
    np.testing.assert_allclose(np.asarray(out), np.asarray(ref), rtol=5e-3, atol=5e-3)

    # 2) self-attention (context=None): fused Q/K/V projection + single-kv-block path
    mod_self = MemoryEfficientCrossAttentionPallas(
        query_dim=query_dim, context_dim=None, heads=heads, dim_head=dim_head,
        key=k_m2, matmul_dtype=jnp.float32)
    out_self = jax.block_until_ready(mod_self(x, None))
    ref_self = jax.block_until_ready(reference_forward(mod_self, x, None))
    np.testing.assert_allclose(np.asarray(out_self), np.asarray(ref_self),
                               rtol=5e-3, atol=5e-3)

    # 3) multi-block flash path: small blocks force 2 q-blocks x 2 kv-blocks and exercise
    #    the fused-KV V BlockSpec (last-axis block index 1) and the online softmax.
    n_q2, n_k2 = 128, 256
    x2 = jax.random.normal(k_x2, (batch, n_q2, query_dim), jnp.float32)
    ctx2 = jax.random.normal(k_ctx2, (batch, n_k2, context_dim), jnp.float32)
    mod_mb = MemoryEfficientCrossAttentionPallas(
        query_dim=query_dim, context_dim=context_dim, heads=heads, dim_head=dim_head,
        key=k_m3, matmul_dtype=jnp.float32, block_q=64, block_k=128)
    out_mb = jax.block_until_ready(mod_mb(x2, ctx2))
    ref_mb = jax.block_until_ready(reference_forward(mod_mb, x2, ctx2))
    np.testing.assert_allclose(np.asarray(out_mb), np.asarray(ref_mb),
                               rtol=5e-3, atol=5e-3)

    # 4) default bf16 MXU operands (f32 accumulation, f32 softmax) -> looser tolerance
    mod_bf16 = MemoryEfficientCrossAttentionPallas(
        query_dim=query_dim, context_dim=context_dim, heads=heads, dim_head=dim_head,
        key=k_m1)   # matmul_dtype defaults to bfloat16
    out_bf16 = jax.block_until_ready(mod_bf16(x, context))
    ref_bf16 = jax.block_until_ready(reference_forward(mod_bf16, x, context))
    np.testing.assert_allclose(np.asarray(out_bf16), np.asarray(ref_bf16),
                               rtol=5e-2, atol=5e-2)

    print("KERNEL_OK")
</pallas_src>

<mosaic_0001>
module attributes {stable_mosaic.version = 11 : i64} {
  func.func @_linear_kernel(%arg0: i32, %arg1: memref<32x32xf32, #tpu.memory_space<vmem>>, %arg2: memref<32x128xf32, #tpu.memory_space<vmem>>, %arg3: memref<32x128xf32, #tpu.memory_space<vmem>>) attributes {dimension_semantics = [#tpu.dimension_semantics<parallel>], iteration_bounds = array<i64: 1>, scalar_prefetch = 0 : i64, scratch_operands = 0 : i64, tpu.core_type = #tpu.core_type<tc>, window_params = [{transform_indices = @transform_0, window_bounds = array<i64: 32, 32>}, {pipeline_mode = #tpu.pipeline_mode<synchronous>, transform_indices = @transform_1, window_bounds = array<i64: 32, 128>}, {transform_indices = @transform_2, window_bounds = array<i64: 32, 128>}]} {
    %c0 = arith.constant 0 : index
    %c0_0 = arith.constant 0 : index
    %0 = vector.load %arg1[%c0, %c0_0] : memref<32x32xf32, #tpu.memory_space<vmem>>, vector<32x32xf32>
    %c0_1 = arith.constant 0 : index
    %c0_2 = arith.constant 0 : index
    %1 = vector.load %arg2[%c0_1, %c0_2] : memref<32x128xf32, #tpu.memory_space<vmem>>, vector<32x128xf32>
    %cst = arith.constant dense<0.000000e+00> : vector<32x128xf32>
    %2 = tpu.matmul %0, %1, %cst {dimension_numbers = #tpu.dot_dimension_numbers<[1], [0], [0], [1], [0, 0, 1, 1], [], []>} : vector<32x32xf32>, vector<32x128xf32>, vector<32x128xf32> -> vector<32x128xf32>
    %c0_3 = arith.constant 0 : index
    %c0_4 = arith.constant 0 : index
    %3 = vector.load %arg3[%c0_3, %c0_4] : memref<32x128xf32, #tpu.memory_space<vmem>>, vector<32x128xf32>
    tpu.vector_store %arg3[%c0_3, %c0_4], %2 {strides = array<i32>} : memref<32x128xf32, #tpu.memory_space<vmem>>, vector<32x128xf32>,
    return
  }
  func.func @transform_0(%arg0: i32) -> (i32, i32) {
    %c0_i32 = arith.constant 0 : i32
    %c0_i32_0 = arith.constant 0 : i32
    return %arg0, %c0_i32 : i32, i32
  }
  func.func @transform_1(%arg0: i32) -> (i32, i32) {
    %c0_i32 = arith.constant 0 : i32
    %c0_i32_0 = arith.constant 0 : i32
    %c0_i32_1 = arith.constant 0 : i32
    return %c0_i32, %c0_i32_0 : i32, i32
  }
  func.func @transform_2(%arg0: i32) -> (i32, i32) {
    %c0_i32 = arith.constant 0 : i32
    %c0_i32_0 = arith.constant 0 : i32
    return %arg0, %c0_i32 : i32, i32
  }
}

</mosaic_0001>

<bundles_post_ra>
// kernel: tpu_custom_call.1
= control target key start
LH: loop header
LB: loop body
LE: loop exit
PB: predicated region body
PF: predicated region fallthrough
CT: control target
= control target key end

     0   :  { %7 = vsyncpa [#allocation3], 0  ;;  %s255_s0 = inlined_call_operand.hbm [shape: f32[32,32], index: 0, kind: input, shape index: {}]   ;;  %s256_s1 = inlined_call_operand.hbm [shape: f32[32,128], index: 1, kind: input, shape index: {}]   ;;  %s257_s2 = inlined_call_operand.hbm [shape: f32[32,128], index: 2, kind: output, shape index: {}]  }
   0x1   :  { %8 = vsyncpa [#allocation6], 0 }
   0x2   :  { %9 = vsyncpa [#allocation4], 0  ;;  %s14_s11 = sshll.u32 %s255_s0, 4  ;;  %s217_s12 = smov [#allocation2]   ;;  %s15_s11 = int_to_ptr.hbm [resolvable:$true] %s14_s11 }
   0x3   :  { %s16_s13 = sshll.u32 %s217_s12, 4  ;;  %s27_s16 = sshll.u32 %s256_s1, 4  ;;  %s17_s13 = int_to_ptr.vmem [resolvable:$true] %s16_s13  ;;  %s28_s16 = int_to_ptr.hbm [resolvable:$true] %s27_s16 }
   0x4   :  { %s218_s17 = smov 128   ;;  %s219_s18 = smov 8  }
   0x5   :  { %22 = dma.hbm_to_vmem [thread:$0]  %s15_s11, 512, %s17_s13, [#allocation3], %s218_s17, %s218_s17, %s219_s18  }
   0x6   :  { %s220_s19 = smov [#allocation5]  }
   0x7   :  { %s29_s20 = sshll.u32 %s220_s19, 4  ;;  %s30_s20 = int_to_ptr.vmem [resolvable:$true] %s29_s20 }
   0x8   :  { %35 = dma.hbm_to_vmem [thread:$0]  %s28_s16, 512, %s30_s20, [#allocation6], %s218_s17, %s218_s17, %s219_s18  }
   0x9   :  { %211 = dma.done.wait [#allocation3], 512  }
   0xa   :  { %212 = vsyncadd [#allocation3], 4294966784 }
   0xb   :  { %213 = dma.done.wait [#allocation6], 512  }
   0xc   :  { %214 = vsyncadd [#allocation6], 4294966784  ;;  %v51_v0 = vld [vmem:[#allocation5 + $0x18] sm:$0xff]  ;;  %v50_v1 = vld [vmem:[#allocation5 + $0x10] sm:$0xff]  ;;  %vm52_vm0 = vcmask 261120   ;;  %s221_s0 = smov [#allocation7]  }
   0xd   :  { %123 = vmatpush.msra.mxu2 %v51_v0  ;;  %124 = vmatpush.msra.mxu3 %v51_v0  ;;  %v49_v2 = vld [vmem:[#allocation5 + $0x8] sm:$0xff]  ;;  %v48_v3 = vld [vmem:[#allocation5] sm:$0xff]  ;;  %v46_v4 = vld [vmem:[#allocation2 + $0x10] sm:$0xff]  ;;  %s102_s1 = sshll.u32 %s221_s0, 4  ;;  %s104_s23 = sshll.u32 %s257_s2, 4  ;;  %s103_s1 = int_to_ptr.vmem [resolvable:$true] %s102_s1  ;;  %s105_s23 = int_to_ptr.hbm [resolvable:$true] %s104_s23 }
   0xe   :  { %77 = vmatpush.msra.mxu0 %v51_v0  ;;  %122 = vmatpush.msra.mxu1 %v51_v0  ;;  %v47_v5 = vld [vmem:[#allocation2 + $0x18] sm:$0xff]  ;;  %v44_v6 = vld [vmem:[#allocation2] sm:$0xff]  ;;  %v45_v7 = vld [vmem:[#allocation2 + $0x8] sm:$0xff] }
   0xf   :  { %126 = vmatpush.msra.mxu2 %v50_v1  ;;  %127 = vmatpush.msra.mxu3 %v50_v1 }
  0x10   :  { %78 = vmatpush.msra.mxu0 %v50_v1  ;;  %125 = vmatpush.msra.mxu1 %v50_v1 }
  0x11   :  { %129 = vmatpush.msra.mxu2 %v49_v2  ;;  %130 = vmatpush.msra.mxu3 %v49_v2 }
  0x12   :  { %79 = vmatpush.msra.mxu0 %v49_v2  ;;  %128 = vmatpush.msra.mxu1 %v49_v2 }
  0x13   :  { %132 = vmatpush.msra.mxu2 %v48_v3  ;;  %133 = vmatpush.msra.mxu3 %v48_v3 }
  0x14   :  { %120 = vmatmul.msk.f32.vlgmr.msra.gmra.mxu2 %vm52_vm0, %v46_v4  ;;  %121 = vmatmul.msk.f32.vlgmr.msra.gmra.mxu3 %vm52_vm0, %v47_v5 }
  0x15   :  { %80 = vmatpush.msra.mxu0 %v48_v3  ;;  %131 = vmatpush.msra.mxu1 %v48_v3 }
  0x16   :  { %118 = vmatmul.msk.f32.vlgmr.msra.gmra.mxu0 %vm52_vm0, %v44_v6  ;;  %119 = vmatmul.msk.f32.vlgmr.msra.gmra.mxu1 %vm52_vm0, %v45_v7 }
  0x93   :  { %v82_v8 = vpop.f32.mrf.mxu0  ;;  %v85_v9 = vpop.f32.mrf.mxu1 }
  0x94   :  { %94 = vst [vmem:[#allocation7] sm:$0xff] %v82_v8 }
  0x95   :  { %95 = vst [vmem:[#allocation7 + $0x8] sm:$0xff] %v85_v9 }
  0x97   :  { %v88_v10 = vpop.f32.mrf.mxu2  ;;  %v91_v11 = vpop.f32.mrf.mxu3 }
  0x98   :  { %96 = vst [vmem:[#allocation7 + $0x10] sm:$0xff] %v88_v10 }
  0x99   :  { %97 = vst [vmem:[#allocation7 + $0x18] sm:$0xff] %v91_v11 }
  0x9a   :  { %110 = dma.vmem_to_hbm [thread:$0]  %s103_s1, 512, %s105_s23, [#allocation4], %s218_s17, %s218_s17, %s219_s18  }
  0x9b   :  { %215 = dma.done.wait [#allocation4], 512  }
  0x9c   :  { %216 = vsyncadd [#allocation4], 4294966784 }
  0x9d   :  { %115 = vsyncpa [#allocation3], 1 }
  0x9e   :  { %116 = vsyncpa [#allocation6], 1 }
  0x9f   :  { %117 = vsyncpa [#allocation4], 1 }

</bundles_post_ra>
